<compile_context>
chip_gen: v7x
topology: tpu7x:2x2x1
jax: 0.10.0
libtpu: 0.0.40
codegen_flags: <defaults>
</compile_context>

<pallas_src>
from functools import partial

import jax
import jax.numpy as jnp
from jax import lax
from jax.experimental import pallas as pl
from jax.experimental.pallas import tpu as pltpu


def _pick_block(n, candidates=(256, 128, 64, 32, 16, 8)):
    """Largest candidate that divides n; fall back to the full extent."""
    for c in candidates:
        if n >= c and n % c == 0:
            return c
    return n


# ------------------------------------------------------------------ linear --
def _linear_kernel(x_ref, w_ref, b_ref, o_ref):
    # bf16 operands into the MXU, f32 accumulation, bias add in f32.
    x = x_ref[...].astype(jnp.bfloat16)
    w = w_ref[...].astype(jnp.bfloat16)
    acc = jnp.dot(x, w, preferred_element_type=jnp.float32)
    acc = acc + b_ref[...].astype(jnp.float32)
    o_ref[...] = acc.astype(o_ref.dtype)


def _linear(x, w, b, out_dtype):
    """y = x @ w + b, gridded over rows of x.  x:(M,K)  w:(K,N)  b:(1,N)."""
    M, K = x.shape
    _, N = w.shape
    tm = _pick_block(M)
    return pl.pallas_call(
        _linear_kernel,
        out_shape=jax.ShapeDtypeStruct((M, N), out_dtype),
        grid=(M // tm,),
        in_specs=[
            pl.BlockSpec((tm, K), lambda i: (i, 0)),
            pl.BlockSpec((K, N), lambda i: (0, 0)),   # weight: constant block, stays resident
            pl.BlockSpec((1, N), lambda i: (0, 0)),   # bias:   constant block
        ],
        out_specs=pl.BlockSpec((tm, N), lambda i: (i, 0)),
        compiler_params=pltpu.CompilerParams(
            dimension_semantics=("parallel",),
            vmem_limit_bytes=48 * 1024 * 1024,
        ),
    )(x, w, b)


# --------------------------------------------------------- flash attention --
def _flash_kernel(q_ref, k_ref, v_ref, o_ref, m_sc, l_sc, acc_sc, *, scale):
    kv = pl.program_id(2)

    @pl.when(kv == 0)
    def _():
        m_sc[...] = jnp.full_like(m_sc, -jnp.inf)
        l_sc[...] = jnp.zeros_like(l_sc)
        acc_sc[...] = jnp.zeros_like(acc_sc)

    # Fold 1/sqrt(head_dim) into q (elementwise math in f32, bf16 into the MXU).
    q = (q_ref[...].astype(jnp.float32) * scale).astype(jnp.bfloat16)   # (tq, hd)
    k = k_ref[...].astype(jnp.bfloat16)                                 # (tk, hd)

    # scores = q @ k^T via a last-dim contraction (no explicit transpose/relayout).
    s = lax.dot_general(q, k, (((1,), (1,)), ((), ())),
                        preferred_element_type=jnp.float32)             # (tq, tk)

    # Online softmax update (all elementwise math kept in f32 for v5e's VPU/EUP).
    m_prev = m_sc[...]
    m_new = jnp.maximum(m_prev, s.max(axis=-1, keepdims=True))
    alpha = jnp.exp(m_prev - m_new)
    p = jnp.exp(s - m_new)
    l_sc[...] = alpha * l_sc[...] + p.sum(axis=-1, keepdims=True)
    acc_sc[...] = alpha * acc_sc[...] + jnp.dot(
        p.astype(jnp.bfloat16), v_ref[...].astype(jnp.bfloat16),
        preferred_element_type=jnp.float32)
    m_sc[...] = m_new

    @pl.when(kv == pl.num_programs(2) - 1)
    def _():
        o_ref[...] = (acc_sc[...] * pl.reciprocal(l_sc[...], approx=True)
                      ).astype(o_ref.dtype)


def _flash_attention(q, k, v, *, scale):
    """q, k, v: (H, S, hd) -> (H, S, hd) per-head softmax(q k^T / sqrt(hd)) v."""
    H, S, hd = q.shape
    tq = _pick_block(S)
    tk = _pick_block(S)
    return pl.pallas_call(
        partial(_flash_kernel, scale=scale),
        out_shape=jax.ShapeDtypeStruct((H, S, hd), q.dtype),
        grid=(H, S // tq, S // tk),
        in_specs=[
            pl.BlockSpec((None, tq, hd), lambda h, qi, ki: (h, qi, 0)),
            pl.BlockSpec((None, tk, hd), lambda h, qi, ki: (h, ki, 0)),
            pl.BlockSpec((None, tk, hd), lambda h, qi, ki: (h, ki, 0)),
        ],
        out_specs=pl.BlockSpec((None, tq, hd), lambda h, qi, ki: (h, qi, 0)),
        scratch_shapes=[
            pltpu.VMEM((tq, 1), jnp.float32),    # running max
            pltpu.VMEM((tq, 1), jnp.float32),    # running sum
            pltpu.VMEM((tq, hd), jnp.float32),   # un-normalized output accumulator
        ],
        compiler_params=pltpu.CompilerParams(
            dimension_semantics=("parallel", "parallel", "arbitrary"),
            vmem_limit_bytes=48 * 1024 * 1024,
        ),
    )(q, k, v)


# ----------------------------------------------------------------- wrapper --
def custom_mhsa(x, w_in, b_in, w_out, b_out, num_heads):
    """x: (1, S, E); w_in: (E, 3E), b_in: (1, 3E), w_out: (E, E), b_out: (1, E).

    Matches CustomMultiHeadSelfAttention.forward with dropout=0.0 (inference).
    Batch must be 1 (the PyTorch module's torch.squeeze on keys requires it).
    """
    assert x.shape[0] == 1, "module semantics (torch.squeeze on keys) require batch == 1"
    _, S, E = x.shape
    assert E % num_heads == 0, "embed_dim must be divisible by num_heads"
    hd = E // num_heads
    scale = 1.0 / (hd ** 0.5)

    x2d = x[0]                                                   # (S, E)

    # 1) in_proj (kept as one big (S,E)@(E,3E) matmul; bf16 intermediate halves
    #    HBM traffic for qkv).
    qkv = _linear(x2d, w_in, b_in, out_dtype=jnp.bfloat16)       # (S, 3E)

    # Layout plumbing (XLA-side, one-time): split q/k/v and heads -> (3, H, S, hd).
    qkv = jnp.transpose(qkv.reshape(S, 3, num_heads, hd), (1, 2, 0, 3))
    q, k, v = qkv[0], qkv[1], qkv[2]                             # each (H, S, hd)

    # 2) flash attention over (heads, q_blocks, kv_blocks).
    attn = _flash_attention(q, k, v, scale=scale)                # (H, S, hd)

    # Concatenate heads along the embedding dim (matches torch.cat on dim=2).
    attn2d = jnp.transpose(attn, (1, 0, 2)).reshape(S, E)        # (S, E)
    # TODO(synk): for head_dim < 128 the attention kernel's stores are not
    # lane-dense; packing heads along lanes inside the kernel would avoid the
    # masked vst path for tiny head dims.

    # 3) out_proj.
    out = _linear(attn2d, w_out, b_out, out_dtype=x.dtype)       # (S, E)
    return out[None]                                             # (1, S, E)


# --------------------------------------------------------------- reference --
def reference_mhsa(x, w_in, b_in, w_out, b_out, num_heads):
    """Pure-JAX f32 reference mirroring the PyTorch forward (batch == 1)."""
    _, S, E = x.shape
    hd = E // num_heads
    norm = hd ** 0.5
    qkv = x[0] @ w_in + b_in[0]
    q, k, v = qkv[:, :E], qkv[:, E:2 * E], qkv[:, 2 * E:]
    outs = []
    for h in range(num_heads):
        sl = slice(h * hd, (h + 1) * hd)
        s = (q[:, sl] @ k[:, sl].T) / norm
        p = jax.nn.softmax(s, axis=-1)
        outs.append(p @ v[:, sl])
    out = jnp.concatenate(outs, axis=-1)
    return (out @ w_out + b_out[0])[None]


if __name__ == "__main__":
    # Small shapes consistent with the module: batch=1 (required), seq=8, embed=32, heads=4.
    B, S, E, H = 1, 8, 32, 4

    key = jax.random.PRNGKey(0)
    kx, k1, k2, k3, k4 = jax.random.split(key, 5)

    x = jax.random.normal(kx, (B, S, E), dtype=jnp.float32)

    # nn.Linear-style init; weights stored pre-transposed for y = x @ W^T + b.
    scale_in = 1.0 / (E ** 0.5)
    w_in = jax.random.uniform(k1, (E, 3 * E), jnp.float32, -scale_in, scale_in)
    b_in = jax.random.uniform(k2, (1, 3 * E), jnp.float32, -scale_in, scale_in)
    w_out = jax.random.uniform(k3, (E, E), jnp.float32, -scale_in, scale_in)
    b_out = jax.random.uniform(k4, (1, E), jnp.float32, -scale_in, scale_in)

    y = custom_mhsa(x, w_in, b_in, w_out, b_out, num_heads=H)
    y = jax.block_until_ready(y)

    y_ref = reference_mhsa(x, w_in, b_in, w_out, b_out, num_heads=H)
    assert y.shape == (B, S, E)
    # bf16 MXU operands + approx reciprocal => loosened tolerance vs f32 reference.
    assert jnp.allclose(y, y_ref, atol=3e-2, rtol=3e-2), \
        f"max abs err {float(jnp.max(jnp.abs(y - y_ref)))}"

    print("KERNEL_OK")
</pallas_src>

<mosaic_0001>
module attributes {stable_mosaic.version = 11 : i64} {
  func.func @_linear_kernel(%arg0: i32, %arg1: memref<8x32xf32, #tpu.memory_space<vmem>>, %arg2: memref<32x96xf32, #tpu.memory_space<vmem>>, %arg3: memref<1x96xf32, #tpu.memory_space<vmem>>, %arg4: memref<8x96xbf16, #tpu.memory_space<vmem>>) attributes {dimension_semantics = [#tpu.dimension_semantics<parallel>], iteration_bounds = array<i64: 1>, scalar_prefetch = 0 : i64, scratch_operands = 0 : i64, tpu.core_type = #tpu.core_type<tc>, window_params = [{transform_indices = @transform_0, window_bounds = array<i64: 8, 32>}, {pipeline_mode = #tpu.pipeline_mode<synchronous>, transform_indices = @transform_1, window_bounds = array<i64: 32, 96>}, {pipeline_mode = #tpu.pipeline_mode<synchronous>, transform_indices = @transform_2, window_bounds = array<i64: 1, 96>}, {transform_indices = @transform_3, window_bounds = array<i64: 8, 96>}]} {
    %c0 = arith.constant 0 : index
    %c0_0 = arith.constant 0 : index
    %0 = vector.load %arg1[%c0, %c0_0] : memref<8x32xf32, #tpu.memory_space<vmem>>, vector<8x32xf32>
    %1 = arith.truncf %0 : vector<8x32xf32> to vector<8x32xbf16>
    %c0_1 = arith.constant 0 : index
    %c0_2 = arith.constant 0 : index
    %2 = vector.load %arg2[%c0_1, %c0_2] : memref<32x96xf32, #tpu.memory_space<vmem>>, vector<32x96xf32>
    %3 = arith.truncf %2 : vector<32x96xf32> to vector<32x96xbf16>
    %cst = arith.constant dense<0.000000e+00> : vector<8x96xf32>
    %4 = tpu.matmul %1, %3, %cst {dimension_numbers = #tpu.dot_dimension_numbers<[1], [0], [0], [1], [0, 0, 1, 1], [], []>} : vector<8x32xbf16>, vector<32x96xbf16>, vector<8x96xf32> -> vector<8x96xf32>
    %c0_3 = arith.constant 0 : index
    %c0_4 = arith.constant 0 : index
    %5 = vector.load %arg3[%c0_3, %c0_4] : memref<1x96xf32, #tpu.memory_space<vmem>>, vector<1x96xf32>
    %6 = vector.broadcast %5 : vector<1x96xf32> to vector<8x96xf32>
    %7 = arith.addf %4, %6 : vector<8x96xf32>
    %8 = arith.truncf %7 : vector<8x96xf32> to vector<8x96xbf16>
    %c0_5 = arith.constant 0 : index
    %c0_6 = arith.constant 0 : index
    %9 = vector.load %arg4[%c0_5, %c0_6] : memref<8x96xbf16, #tpu.memory_space<vmem>>, vector<8x96xbf16>
    tpu.vector_store %arg4[%c0_5, %c0_6], %8 {strides = array<i32>} : memref<8x96xbf16, #tpu.memory_space<vmem>>, vector<8x96xbf16>,
    return
  }
  func.func @transform_0(%arg0: i32) -> (i32, i32) {
    %c0_i32 = arith.constant 0 : i32
    %c0_i32_0 = arith.constant 0 : i32
    return %arg0, %c0_i32 : i32, i32
  }
  func.func @transform_1(%arg0: i32) -> (i32, i32) {
    %c0_i32 = arith.constant 0 : i32
    %c0_i32_0 = arith.constant 0 : i32
    %c0_i32_1 = arith.constant 0 : i32
    return %c0_i32, %c0_i32_0 : i32, i32
  }
  func.func @transform_2(%arg0: i32) -> (i32, i32) {
    %c0_i32 = arith.constant 0 : i32
    %c0_i32_0 = arith.constant 0 : i32
    %c0_i32_1 = arith.constant 0 : i32
    return %c0_i32, %c0_i32_0 : i32, i32
  }
  func.func @transform_3(%arg0: i32) -> (i32, i32) {
    %c0_i32 = arith.constant 0 : i32
    %c0_i32_0 = arith.constant 0 : i32
    return %arg0, %c0_i32 : i32, i32
  }
}

</mosaic_0001>

<bundles_post_ra>
// kernel: tpu_custom_call.1
= control target key start
LH: loop header
LB: loop body
LE: loop exit
PB: predicated region body
PF: predicated region fallthrough
CT: control target
= control target key end

     0   :  { %8 = vsyncpa [#allocation3], 0  ;;  %s285_s0 = inlined_call_operand.hbm [shape: f32[8,32], index: 0, kind: input, shape index: {}]   ;;  %s286_s1 = inlined_call_operand.hbm [shape: f32[32,96], index: 1, kind: input, shape index: {}]   ;;  %s287_s2 = inlined_call_operand.vmem [shape: f32[1,96], index: 2, kind: input, shape index: {}]   ;;  %s288_s3 = inlined_call_operand.hbm [shape: bf16[8,96], index: 3, kind: output, shape index: {}]  }
   0x1   :  { %9 = vsyncpa [#allocation6], 0 }
   0x2   :  { %10 = vsyncpa [#allocation4], 0  ;;  %s212_s12 = smov [#allocation2]   ;;  %s213_s14 = smov [#allocation5]  }
   0x3   :  { %s17_s13 = sshll.u32 %s212_s12, 4  ;;  %s26_s15 = sshll.u32 %s213_s14, 4  ;;  %s18_s13 = int_to_ptr.vmem [resolvable:$true] %s17_s13  ;;  %s239_s15 = int_to_ptr.vmem [resolvable:$true] %s26_s15 }
   0x4   :  { %s140_s18 = scalar_lea.hbm %s285_s0, 128 }
   0x5   :  { %p141_p0 = scmp.ne.s32.totalorder %s285_s0, %s140_s18  ;;  %p144_p1 = scmp.lt.u32.totalorder %s140_s18, %s285_s0 }
   0x7   :  { %p146_p2 = pnand %p144_p1, %p141_p0 }
   0x9   :  { %149 = shalt.err (!%p146_p2)
}
   0xa   :  { %s150_s23 = scalar_lea.vmem %s18_s13, 128  ;;  %p155_p4 = scmp.lt.s32.totalorder %s18_s13, %s18_s13 }
   0xb   :  { %p151_p3 = scmp.ne.s32.totalorder %s18_s13, %s150_s23  ;;  %p156_p5 = scmp.lt.s32.totalorder %s150_s23, %s150_s23 }
   0xd   :  { %p157_p6 = por %p156_p5, %p155_p4 }
   0xf   :  { %p158_p7 = pnand %p157_p6, %p151_p3 }
  0x11   :  { %161 = shalt.err (!%p158_p7)
}
  0x12   :  { %20 = dma.hbm_to_vmem [thread:$0]  %s285_s0, 128, %s18_s13, [#allocation3]  }
  0x13   :  { %s162_s28 = scalar_lea.hbm %s286_s1, 512 }
  0x14   :  { %p163_p8 = scmp.ne.s32.totalorder %s286_s1, %s162_s28  ;;  %p166_p9 = scmp.lt.u32.totalorder %s162_s28, %s286_s1 }
  0x16   :  { %p168_p10 = pnand %p166_p9, %p163_p8 }
  0x18   :  { %171 = shalt.err (!%p168_p10)
}
  0x19   :  { %s172_s6 = scalar_lea.vmem %s239_s15, 512  ;;  %p177_p12 = scmp.lt.s32.totalorder %s239_s15, %s239_s15 }
  0x1a   :  { %p173_p11 = scmp.ne.s32.totalorder %s239_s15, %s172_s6  ;;  %p178_p13 = scmp.lt.s32.totalorder %s172_s6, %s172_s6 }
  0x1c   :  { %p179_p0 = por %p178_p13, %p177_p12 }
  0x1e   :  { %p180_p1 = pnand %p179_p0, %p173_p11 }
  0x20   :  { %183 = shalt.err (!%p180_p1)
}
  0x21   :  { %s214_s0 = smov 128   ;;  %s215_s7 = smov 8  }
  0x22   :  { %32 = dma.hbm_to_vmem [thread:$0]  %s286_s1, 512, %s239_s15, [#allocation6], %s214_s0, %s214_s0, %s215_s7  }
  0x23   :  { %206 = dma.done.wait [#allocation3], 128  }
  0x24   :  { %207 = vsyncadd [#allocation3], 4294967168 }
  0x25   :  { %208 = dma.done.wait [#allocation6], 512  }
  0x26   :  { %209 = vsyncadd [#allocation6], 4294966784  ;;  %v216_v0 = vmov 0.0   ;;  %vm217_vm0 = vmmov 0   ;;  %v44_v1 = vld [vmem:[#allocation5] sm:$0xff]  ;;  %v45_v2 = vld [vmem:[#allocation5 + $0x8] sm:$0xff] }
  0x27   :  { %125 = vmatprep.subr.bf16.mxu0 %v216_v0  ;;  %129 = vmatprep.mubr.msk.bf16.mxu0 %vm217_vm0, %v216_v0  ;;  %v46_v3 = vld [vmem:[#allocation5 + $0x10] sm:$0xff]  ;;  %v48_v4 = vpack.c.bf16 %v45_v2, %v44_v1  ;;  %v47_v5 = vld [vmem:[#allocation5 + $0x18] sm:$0xff]  ;;  %vm57_vm1 = vcmask 261120   ;;  %s218_s11 = smov [#allocation7]   ;;  %vm102_vm2 = vcmask 781312  }
  0x28   :  { %v49_v6 = vpack.c.bf16 %v47_v5, %v46_v3  ;;  %v42_v7 = vld [vmem:[#allocation2] sm:$0xff]  ;;  %s110_s12 = sshll.u32 %s218_s11, 4  ;;  %s111_s12 = int_to_ptr.vmem [resolvable:$true] %s110_s12 }
  0x29   :  { %126 = vmatpush3.bf16.msra.mxu0 %v48_v4  ;;  %v43_v8 = vpack.c.bf16 %v42_v7, %v42_v7  ;;  %v120_v9 = vld [vmem:[%s287_s2] ss:$0 sm:$0xff]  ;;  %s184_s13 = scalar_lea.vmem %s111_s12, 64  ;;  %p189_p3 = scmp.lt.s32.totalorder %s111_s12, %s111_s12 }
  0x2a   :  { %127 = vmatprep.subr.bf16.mxu0 %v216_v0  ;;  %p185_p2 = scmp.ne.s32.totalorder %s111_s12, %s184_s13  ;;  %p190_p4 = scmp.lt.s32.totalorder %s184_s13, %s184_s13 }
  0x2c   :  { %p191_p5 = por %p190_p4, %p189_p3 }
  0x2d   :  { %128 = vmatpush3.bf16.msra.mxu0 %v49_v6 }
  0x2e   :  { %p192_p6 = pnand %p191_p5, %p185_p2 }
  0x30   :  { %130 = vmatmul.mubr.msk.bf16.vlgmr.msra.gmra.mrb[0].mxu0 %vm57_vm1, %v43_v8 }
 0x103   :  { %v95_v10 = vpop.f32.mrb[0].mxu0 }
 0x104   :  { %v96_v11 = vadd.f32 %v120_v9, %v95_v10  ;;  %v131_v12 = vpop.f32.mrb[1].mxu0 }
 0x105   :  { %v98_v13 = vpop.f32.mrb[2].mxu0 }
 0x106   :  { %v101_v14 = vpack.c.bf16 %v96_v11, %v96_v11  ;;  %v132_v15 = vpop.f32.mrb[3].mxu0 }
 0x108   :  { %103 = vst.msk [vmem:[#allocation7] sm:$0xf] %vm102_vm2, %v101_v14 }
 0x109   :  { %195 = shalt.err (!%p192_p6)
}
 0x10a   :  { %s196_s15 = scalar_lea.hbm %s288_s3, 64 }
 0x10b   :  { %p197_p7 = scmp.ne.s32.totalorder %s288_s3, %s196_s15  ;;  %p200_p8 = scmp.lt.u32.totalorder %s196_s15, %s288_s3 }
 0x10d   :  { %p202_p9 = pnand %p200_p8, %p197_p7 }
 0x10f   :  { %205 = shalt.err (!%p202_p9)
}
 0x110   :  { %113 = dma.vmem_to_hbm [thread:$0]  %s111_s12, 64, %s288_s3, [#allocation4]  }
 0x111   :  { %210 = dma.done.wait [#allocation4], 64  }
 0x112   :  { %211 = vsyncadd [#allocation4], 4294967232 }
 0x113   :  { %117 = vsyncpa [#allocation3], 1 }
 0x114   :  { %118 = vsyncpa [#allocation6], 1 }
 0x115   :  { %119 = vsyncpa [#allocation4], 1 }

</bundles_post_ra>
